<compile_context>
chip_gen: v6e
topology: v6e:2x2x1
jax: 0.10.0
libtpu: 0.0.40
codegen_flags: <defaults>
</compile_context>

<pallas_src>
import functools
import math

import jax
import jax.numpy as jnp
from jax import lax
from jax.experimental import pallas as pl
from jax.experimental.pallas import tpu as pltpu


def residual_conv_kernel(x_ref, w1p_ref, b1p_ref, w2_ref, b2_ref, mask_ref,
                         o_ref, *, k, pad, Wp, L, Cmid, mma_dtype):
    """One grid step = one (batch-chunk of) image(s), fully fused.

    x_ref   : (Cin, L)          flattened zero-padded image(s), spatial on lanes
    w1p_ref : (Cmid+Cout, KK*Cin)   conv#1 + projection weights (fused)
    b1p_ref : (Cmid+Cout, 1)
    w2_ref  : (Cout, KK*Cmid)
    b2_ref  : (Cout, 1)
    mask_ref: (1, L)            1.0 at valid output pixels (y<H, x<W), else 0.0
    o_ref   : (Cout, L)         lane-dense output in the same flattened layout
    """
    x = x_ref[...]                                   # (Cin, L)
    mask = mask_ref[...]                             # (1, L)

    # ---- conv#1 + projection fused: taps via lane rolls, one MXU matmul -----
    # Output pixel p = y*Wp + x (padded-width stride); tap (dy,dx) reads the
    # flattened padded input at p + dy*Wp + dx, i.e. a left-roll by dy*Wp+dx.
    taps1 = []
    for dy in range(k):
        for dx in range(k):
            t = dy * Wp + dx
            taps1.append(x if t == 0 else pltpu.roll(x, L - t, axis=1))
    patches1 = jnp.concatenate(taps1, axis=0)        # (KK*Cin, L)
    fused = jnp.dot(w1p_ref[...].astype(mma_dtype),
                    patches1.astype(mma_dtype),
                    preferred_element_type=jnp.float32)   # (Cmid+Cout, L)
    fused = jnp.maximum(fused + b1p_ref[...], 0.0)

    # conv#2's zero padding: zero everything outside the valid HxW interior.
    # (mid stays register-resident; no VMEM scratch round-trip.)
    mid = fused[:Cmid, :] * mask                     # (Cmid, L)
    proj = fused[Cmid:, :]                           # (Cout, L)

    # ---- conv#2: same structure, taps read mid at p + (dy-pad)*Wp + (dx-pad)
    taps2 = []
    for dy in range(k):
        for dx in range(k):
            s = ((pad - dy) * Wp + (pad - dx)) % L
            taps2.append(mid if s == 0 else pltpu.roll(mid, s, axis=1))
    patches2 = jnp.concatenate(taps2, axis=0)        # (KK*Cmid, L)
    res = jnp.dot(w2_ref[...].astype(mma_dtype),
                  patches2.astype(mma_dtype),
                  preferred_element_type=jnp.float32)     # (Cout, L)
    res = jnp.maximum(res + b2_ref[...], 0.0)

    # proj >= 0 and res >= 0  =>  relu(proj + res) == proj + res (ReLU folded).
    o_ref[...] = (proj + res).astype(o_ref.dtype)


def residual_conv(x_nchw, params, kernel_size, *, images_per_block=1,
                  mma_dtype=jnp.float32):
    """params: PyTorch layout (w1(O,I,k,k), b1(O,), w2, b2, wp, bp)."""
    w1, b1, w2, b2, wp, bp = params
    N, Cin, H, W = x_nchw.shape
    k = kernel_size
    pad = k // 2
    Cmid = w1.shape[0]
    Cout = w2.shape[0]
    KK = k * k

    Hp, Wp = H + 2 * pad, W + 2 * pad
    NP = Hp * Wp
    NPpad = ((NP + 127) // 128) * 128                # lane-dense: multiple of 128
    NB = images_per_block
    assert N % NB == 0, "images_per_block must divide the batch"
    G = N // NB
    L = NB * NPpad

    # ---- wrapper glue (plain XLA, one-time): pad + flatten, no duplication --
    x_pad = jnp.pad(x_nchw, ((0, 0), (0, 0), (pad, pad), (pad, pad)))
    xf = x_pad.reshape(N, Cin, NP)
    xf = jnp.pad(xf, ((0, 0), (0, 0), (0, NPpad - NP)))
    xf = xf.reshape(G, NB, Cin, NPpad).transpose(0, 2, 1, 3).reshape(G, Cin, L)

    # weights: OIHW -> (dy,dx,ci, O) flat -> transposed so channels sit on M.
    w1h = jnp.transpose(w1, (2, 3, 1, 0)).reshape(KK * Cin, Cmid)
    wph = jnp.transpose(wp, (2, 3, 1, 0)).reshape(KK * Cin, Cout)
    w1p = jnp.concatenate([w1h, wph], axis=1).T               # (Cmid+Cout, KK*Cin)
    b1p = jnp.concatenate([b1, bp]).reshape(Cmid + Cout, 1)
    w2h = jnp.transpose(w2, (2, 3, 1, 0)).reshape(KK * Cmid, Cout).T  # (Cout, KK*Cmid)
    b2r = b2.reshape(Cout, 1)

    # valid-output-pixel mask in the padded-flattened layout (per image, tiled)
    q = jnp.arange(NPpad)
    valid = ((q // Wp) < H) & ((q % Wp) < W)
    mask = jnp.tile(valid.astype(jnp.float32), NB).reshape(1, L)

    kern = functools.partial(residual_conv_kernel, k=k, pad=pad, Wp=Wp, L=L,
                             Cmid=Cmid, mma_dtype=mma_dtype)

    out = pl.pallas_call(
        kern,
        out_shape=jax.ShapeDtypeStruct((G, Cout, L), x_nchw.dtype),
        grid_spec=pltpu.PrefetchScalarGridSpec(
            num_scalar_prefetch=0,
            grid=(G,),                                        # one image-chunk/step
            in_specs=[
                pl.BlockSpec((None, Cin, L), lambda g: (g, 0, 0)),
                pl.BlockSpec((Cmid + Cout, KK * Cin), lambda g: (0, 0)),
                pl.BlockSpec((Cmid + Cout, 1), lambda g: (0, 0)),
                pl.BlockSpec((Cout, KK * Cmid), lambda g: (0, 0)),
                pl.BlockSpec((Cout, 1), lambda g: (0, 0)),
                pl.BlockSpec((1, L), lambda g: (0, 0)),
            ],
            out_specs=pl.BlockSpec((None, Cout, L), lambda g: (g, 0, 0)),
        ),
        compiler_params=pltpu.CompilerParams(
            dimension_semantics=("parallel",),
            vmem_limit_bytes=32 * 1024 * 1024),
    )(xf, w1p, b1p, w2h, b2r, mask)

    # (G, Cout, L) -> (N, Cout, H, W): drop the padded / garbage lane positions.
    out = (out.reshape(G, Cout, NB, NPpad)
              .transpose(0, 2, 1, 3)
              .reshape(N, Cout, NPpad))
    out = out[:, :, :NP].reshape(N, Cout, Hp, Wp)[:, :, :H, :W]
    return out


# ---------------------------- pure-JAX reference -----------------------------
def _conv2d_same_ref(x_nchw, w_oihw, b, pad):
    y = lax.conv_general_dilated(
        x_nchw, w_oihw, window_strides=(1, 1),
        padding=[(pad, pad), (pad, pad)],
        dimension_numbers=('NCHW', 'OIHW', 'NCHW'))
    return y + b.reshape(1, -1, 1, 1)


def _conv_block_ref(x, w, b, pad):
    return jax.nn.relu(_conv2d_same_ref(x, w, b, pad))


def residual_conv_ref(x, params, k):
    w1, b1, w2, b2, wp, bp = params
    pad = k // 2
    res = _conv_block_ref(_conv_block_ref(x, w1, b1, pad), w2, b2, pad)
    proj = _conv_block_ref(x, wp, bp, pad)
    return jax.nn.relu(proj + res)


if __name__ == "__main__":
    key = jax.random.PRNGKey(0)
    N, Cin, H, W = 2, 4, 16, 16
    Cmid, Cout, k = 8, 4, 3

    ks = jax.random.split(key, 7)
    x = jax.random.normal(ks[0], (N, Cin, H, W), jnp.float32)

    def init_conv(kw, kb, o, i):
        # deterministic PyTorch-like uniform init, synthetic (no checkpoint)
        bound = 1.0 / math.sqrt(i * k * k)
        w = jax.random.uniform(kw, (o, i, k, k), jnp.float32, -bound, bound)
        b = jax.random.uniform(kb, (o,), jnp.float32, -bound, bound)
        return w, b

    w1, b1 = init_conv(ks[1], ks[2], Cmid, Cin)
    w2, b2 = init_conv(ks[3], ks[4], Cout, Cmid)
    wp, bp = init_conv(ks[5], ks[6], Cout, Cin)
    params = (w1, b1, w2, b2, wp, bp)

    out = residual_conv(x, params, k, images_per_block=1)
    out = jax.block_until_ready(out)

    ref = residual_conv_ref(x, params, k)
    assert out.shape == ref.shape == (N, Cout, H, W)
    assert jnp.allclose(out, ref, atol=1e-4, rtol=1e-4), "mismatch vs reference"
    print("KERNEL_OK")
</pallas_src>

<mosaic_0001>
module attributes {stable_mosaic.version = 11 : i64} {
  func.func @residual_conv_kernel(%arg0: i32, %arg1: memref<1x4x384xf32, #tpu.memory_space<vmem>>, %arg2: memref<12x36xf32, #tpu.memory_space<vmem>>, %arg3: memref<12x1xf32, #tpu.memory_space<vmem>>, %arg4: memref<4x72xf32, #tpu.memory_space<vmem>>, %arg5: memref<4x1xf32, #tpu.memory_space<vmem>>, %arg6: memref<1x384xf32, #tpu.memory_space<vmem>>, %arg7: memref<1x4x384xf32, #tpu.memory_space<vmem>>) attributes {dimension_semantics = [#tpu.dimension_semantics<parallel>], iteration_bounds = array<i64: 2>, scalar_prefetch = 0 : i64, scratch_operands = 0 : i64, tpu.core_type = #tpu.core_type<tc>, window_params = [{transform_indices = @transform_0, window_bounds = array<i64: 1, 4, 384>}, {pipeline_mode = #tpu.pipeline_mode<synchronous>, transform_indices = @transform_1, window_bounds = array<i64: 12, 36>}, {pipeline_mode = #tpu.pipeline_mode<synchronous>, transform_indices = @transform_2, window_bounds = array<i64: 12, 1>}, {pipeline_mode = #tpu.pipeline_mode<synchronous>, transform_indices = @transform_3, window_bounds = array<i64: 4, 72>}, {pipeline_mode = #tpu.pipeline_mode<synchronous>, transform_indices = @transform_4, window_bounds = array<i64: 4, 1>}, {pipeline_mode = #tpu.pipeline_mode<synchronous>, transform_indices = @transform_5, window_bounds = array<i64: 1, 384>}, {transform_indices = @transform_6, window_bounds = array<i64: 1, 4, 384>}]} {
    %c0 = arith.constant 0 : index
    %c0_0 = arith.constant 0 : index
    %c0_1 = arith.constant 0 : index
    %0 = vector.load %arg1[%c0, %c0_0, %c0_1] : memref<1x4x384xf32, #tpu.memory_space<vmem>>, vector<1x4x384xf32>
    %1 = vector.shape_cast %0 : vector<1x4x384xf32> to vector<4x384xf32>
    %c0_2 = arith.constant 0 : index
    %c0_3 = arith.constant 0 : index
    %2 = vector.load %arg6[%c0_2, %c0_3] : memref<1x384xf32, #tpu.memory_space<vmem>>, vector<1x384xf32>
    %c383_i32 = arith.constant 383 : i32
    %3 = tpu.dynamic_rotate %1 by %c383_i32 dim 1 : vector<4x384xf32>, i32 -> vector<4x384xf32>
    %c382_i32 = arith.constant 382 : i32
    %4 = tpu.dynamic_rotate %1 by %c382_i32 dim 1 : vector<4x384xf32>, i32 -> vector<4x384xf32>
    %c366_i32 = arith.constant 366 : i32
    %5 = tpu.dynamic_rotate %1 by %c366_i32 dim 1 : vector<4x384xf32>, i32 -> vector<4x384xf32>
    %c365_i32 = arith.constant 365 : i32
    %6 = tpu.dynamic_rotate %1 by %c365_i32 dim 1 : vector<4x384xf32>, i32 -> vector<4x384xf32>
    %c364_i32 = arith.constant 364 : i32
    %7 = tpu.dynamic_rotate %1 by %c364_i32 dim 1 : vector<4x384xf32>, i32 -> vector<4x384xf32>
    %c348_i32 = arith.constant 348 : i32
    %8 = tpu.dynamic_rotate %1 by %c348_i32 dim 1 : vector<4x384xf32>, i32 -> vector<4x384xf32>
    %c347_i32 = arith.constant 347 : i32
    %9 = tpu.dynamic_rotate %1 by %c347_i32 dim 1 : vector<4x384xf32>, i32 -> vector<4x384xf32>
    %c346_i32 = arith.constant 346 : i32
    %10 = tpu.dynamic_rotate %1 by %c346_i32 dim 1 : vector<4x384xf32>, i32 -> vector<4x384xf32>
    %11 = tpu.concatenate %1, %3, %4, %5, %6, %7, %8, %9, %10 in 0 : vector<4x384xf32>, vector<4x384xf32>, vector<4x384xf32>, vector<4x384xf32>, vector<4x384xf32>, vector<4x384xf32>, vector<4x384xf32>, vector<4x384xf32>, vector<4x384xf32> -> vector<36x384xf32>
    %c0_4 = arith.constant 0 : index
    %c0_5 = arith.constant 0 : index
    %12 = vector.load %arg2[%c0_4, %c0_5] : memref<12x36xf32, #tpu.memory_space<vmem>>, vector<12x36xf32>
    %cst = arith.constant dense<0.000000e+00> : vector<12x384xf32>
    %13 = tpu.matmul %12, %11, %cst {dimension_numbers = #tpu.dot_dimension_numbers<[1], [0], [0], [1], [0, 0, 1, 1], [], []>} : vector<12x36xf32>, vector<36x384xf32>, vector<12x384xf32> -> vector<12x384xf32>
    %c0_6 = arith.constant 0 : index
    %c0_7 = arith.constant 0 : index
    %14 = vector.load %arg3[%c0_6, %c0_7] : memref<12x1xf32, #tpu.memory_space<vmem>>, vector<12x1xf32>
    %15 = vector.broadcast %14 : vector<12x1xf32> to vector<12x384xf32>
    %16 = arith.addf %13, %15 : vector<12x384xf32>
    %cst_8 = arith.constant 0.000000e+00 : f32
    %17 = vector.broadcast %cst_8 : f32 to vector<12x384xf32>
    %18 = arith.maximumf %16, %17 : vector<12x384xf32>
    %19 = vector.extract_strided_slice %18 {offsets = [0, 0], sizes = [8, 384], strides = [1, 1]} : vector<12x384xf32> to vector<8x384xf32>
    %20 = vector.broadcast %2 : vector<1x384xf32> to vector<8x384xf32>
    %21 = arith.mulf %19, %20 : vector<8x384xf32>
    %22 = vector.extract_strided_slice %18 {offsets = [8, 0], sizes = [4, 384], strides = [1, 1]} : vector<12x384xf32> to vector<4x384xf32>
    %c19_i32 = arith.constant 19 : i32
    %23 = tpu.dynamic_rotate %21 by %c19_i32 dim 1 : vector<8x384xf32>, i32 -> vector<8x384xf32>
    %c18_i32 = arith.constant 18 : i32
    %24 = tpu.dynamic_rotate %21 by %c18_i32 dim 1 : vector<8x384xf32>, i32 -> vector<8x384xf32>
    %c17_i32 = arith.constant 17 : i32
    %25 = tpu.dynamic_rotate %21 by %c17_i32 dim 1 : vector<8x384xf32>, i32 -> vector<8x384xf32>
    %c1_i32 = arith.constant 1 : i32
    %26 = tpu.dynamic_rotate %21 by %c1_i32 dim 1 : vector<8x384xf32>, i32 -> vector<8x384xf32>
    %c383_i32_9 = arith.constant 383 : i32
    %27 = tpu.dynamic_rotate %21 by %c383_i32_9 dim 1 : vector<8x384xf32>, i32 -> vector<8x384xf32>
    %c367_i32 = arith.constant 367 : i32
    %28 = tpu.dynamic_rotate %21 by %c367_i32 dim 1 : vector<8x384xf32>, i32 -> vector<8x384xf32>
    %c366_i32_10 = arith.constant 366 : i32
    %29 = tpu.dynamic_rotate %21 by %c366_i32_10 dim 1 : vector<8x384xf32>, i32 -> vector<8x384xf32>
    %c365_i32_11 = arith.constant 365 : i32
    %30 = tpu.dynamic_rotate %21 by %c365_i32_11 dim 1 : vector<8x384xf32>, i32 -> vector<8x384xf32>
    %31 = tpu.concatenate %23, %24, %25, %26, %21, %27, %28, %29, %30 in 0 : vector<8x384xf32>, vector<8x384xf32>, vector<8x384xf32>, vector<8x384xf32>, vector<8x384xf32>, vector<8x384xf32>, vector<8x384xf32>, vector<8x384xf32>, vector<8x384xf32> -> vector<72x384xf32>
    %c0_12 = arith.constant 0 : index
    %c0_13 = arith.constant 0 : index
    %32 = vector.load %arg4[%c0_12, %c0_13] : memref<4x72xf32, #tpu.memory_space<vmem>>, vector<4x72xf32>
    %cst_14 = arith.constant dense<0.000000e+00> : vector<4x384xf32>
    %33 = tpu.matmul %32, %31, %cst_14 {dimension_numbers = #tpu.dot_dimension_numbers<[1], [0], [0], [1], [0, 0, 1, 1], [], []>} : vector<4x72xf32>, vector<72x384xf32>, vector<4x384xf32> -> vector<4x384xf32>
    %c0_15 = arith.constant 0 : index
    %c0_16 = arith.constant 0 : index
    %34 = vector.load %arg5[%c0_15, %c0_16] : memref<4x1xf32, #tpu.memory_space<vmem>>, vector<4x1xf32>
    %35 = vector.broadcast %34 : vector<4x1xf32> to vector<4x384xf32>
    %36 = arith.addf %33, %35 : vector<4x384xf32>
    %cst_17 = arith.constant 0.000000e+00 : f32
    %37 = vector.broadcast %cst_17 : f32 to vector<4x384xf32>
    %38 = arith.maximumf %36, %37 : vector<4x384xf32>
    %39 = arith.addf %22, %38 : vector<4x384xf32>
    %c0_18 = arith.constant 0 : index
    %c0_19 = arith.constant 0 : index
    %c0_20 = arith.constant 0 : index
    %40 = vector.load %arg7[%c0_18, %c0_19, %c0_20] : memref<1x4x384xf32, #tpu.memory_space<vmem>>, vector<1x4x384xf32>
    %41 = vector.shape_cast %40 : vector<1x4x384xf32> to vector<4x384xf32>
    %42 = vector.shape_cast %39 : vector<4x384xf32> to vector<1x4x384xf32>
    tpu.vector_store %arg7[%c0_18, %c0_19, %c0_20], %42 {strides = array<i32>} : memref<1x4x384xf32, #tpu.memory_space<vmem>>, vector<1x4x384xf32>,
    return
  }
  func.func @transform_0(%arg0: i32) -> (i32, i32, i32) {
    %c0_i32 = arith.constant 0 : i32
    %c0_i32_0 = arith.constant 0 : i32
    %c0_i32_1 = arith.constant 0 : i32
    return %arg0, %c0_i32, %c0_i32_0 : i32, i32, i32
  }
  func.func @transform_1(%arg0: i32) -> (i32, i32) {
    %c0_i32 = arith.constant 0 : i32
    %c0_i32_0 = arith.constant 0 : i32
    %c0_i32_1 = arith.constant 0 : i32
    return %c0_i32, %c0_i32_0 : i32, i32
  }
  func.func @transform_2(%arg0: i32) -> (i32, i32) {
    %c0_i32 = arith.constant 0 : i32
    %c0_i32_0 = arith.constant 0 : i32
    %c0_i32_1 = arith.constant 0 : i32
    return %c0_i32, %c0_i32_0 : i32, i32
  }
  func.func @transform_3(%arg0: i32) -> (i32, i32) {
    %c0_i32 = arith.constant 0 : i32
    %c0_i32_0 = arith.constant 0 : i32
    %c0_i32_1 = arith.constant 0 : i32
    return %c0_i32, %c0_i32_0 : i32, i32
  }
  func.func @transform_4(%arg0: i32) -> (i32, i32) {
    %c0_i32 = arith.constant 0 : i32
    %c0_i32_0 = arith.constant 0 : i32
    %c0_i32_1 = arith.constant 0 : i32
    return %c0_i32, %c0_i32_0 : i32, i32
  }
  func.func @transform_5(%arg0: i32) -> (i32, i32) {
    %c0_i32 = arith.constant 0 : i32
    %c0_i32_0 = arith.constant 0 : i32
    %c0_i32_1 = arith.constant 0 : i32
    return %c0_i32, %c0_i32_0 : i32, i32
  }
  func.func @transform_6(%arg0: i32) -> (i32, i32, i32) {
    %c0_i32 = arith.constant 0 : i32
    %c0_i32_0 = arith.constant 0 : i32
    %c0_i32_1 = arith.constant 0 : i32
    return %arg0, %c0_i32, %c0_i32_0 : i32, i32, i32
  }
}

</mosaic_0001>

<bundles_post_ra>
// kernel: tpu_custom_call.1
= control target key start
LH: loop header
LB: loop body
LE: loop exit
PB: predicated region body
PF: predicated region fallthrough
CT: control target
= control target key end

     0   :  { %11 = vsyncpa [#allocation3], 0  ;;  %s1567_s0 = inlined_call_operand.hbm [shape: f32[2,4,384], index: 0, kind: input, shape index: {}]   ;;  %s1568_s1 = inlined_call_operand.vmem [shape: f32[12,36], index: 1, kind: input, shape index: {}]   ;;  %s1569_s2 = inlined_call_operand.vmem [shape: f32[12,1], index: 2, kind: input, shape index: {}]   ;;  %s1570_s3 = inlined_call_operand.vmem [shape: f32[4,72], index: 3, kind: input, shape index: {}]   ;;  %s1571_s4 = inlined_call_operand.vmem [shape: f32[4,1], index: 4, kind: input, shape index: {}]   ;;  %s1572_s5 = inlined_call_operand.vmem [shape: f32[1,384], index: 5, kind: input, shape index: {}]   ;;  %s1573_s6 = inlined_call_operand.hbm [shape: f32[2,4,384], index: 6, kind: output, shape index: {}]  }
   0x1   :  { %13 = vsyncpa [#allocation3 + $0x1], 0 }
   0x2   :  { %14 = vsyncpa [#allocation4], 0 }
   0x3   :  { %16 = vsyncpa [#allocation4 + $0x1], 0  ;;  %s1222_s21 = smov 0   ;;  %s1224_s22 = smov 0  }
   0x4   :  { %s1226_s23 = smov 0   ;;  %s1228_s24 = smov 0  }
   0x5 LB: > { %s1243_s25 = sadd.s32 4294967295, %s1167_s24   ;;  %s938_s26 = sadd.s32 4294967294, %s1167_s24   ;;  %s1167_s24 = sphi %s1228_s24, %s1589_s24   ;;  %s1163_s23 = sphi %s1226_s23, %s1588_s23   ;;  %s1159_s22 = sphi %s1224_s22, %s1587_s22   ;;  %s1155_s21 = sphi %s1222_s21, %s1586_s21  }
   0x6   : > { %s1247_s27 = sadd.s32 1, %s1167_s24   ;;  %s29_s28 = sadd.s32 1, %s1163_s23 }
   0x7   : > { %s26_s29 = ssub.s32 %s1167_s24, %s1247_s27  ;;  %p36_p0 = scmp.ne.s32.totalorder %s1163_s23, %s1159_s22 }
   0x8   : > { %p27_p1 = scmp.eq.s32.totalorder %s26_s29, 0  ;;  %p37_p2 = scmp.eq.s32.totalorder %s1167_s24, 0 }
   0x9   : > { %p42_p3 = scmp.ne.s32.totalorder %s1159_s22, %s1155_s21  ;;  %p43_p4 = scmp.eq.s32.totalorder %s1243_s25, 0 }
   0xa   : > { %s1259_s30 = scalar_select %p27_p1, %s1163_s23, %s29_s28  }
   0xb   : > { %p38_p5 = por %p37_p2, %p36_p0  ;;  %p1261_p6 = por %p43_p4, %p42_p3 }
   0xc   : > { %p171_p7 = scmp.eq.s32.totalorder %s1243_s25, 1  ;;  %p177_p8 = scmp.eq.s32.totalorder %s938_s26, 1 }
   0xd   : > { %s1576_s7 = scalar_select %p1261_p6, 1, 0 }
   0xe   : > { %p1022_p10 = scmp.lt.s32.totalorder %s1167_s24, 2  ;;  %p1268_p11 = por %p171_p7, %p36_p0 }
   0xf   : > { %p1272_p12 = por %p177_p8, %p42_p3  ;;  %s212_s10 = sand.u32 1, %s1163_s23  }
  0x10   : > { %s1577_s8 = scalar_select %p1268_p11, 1, 0 }
  0x11   : > { %s1578_s9 = scalar_select %p1272_p12, 1, 0 }
  0x12   : > { %s1007_s11 = smul.u32 192, %s1167_s24  ;;  %p1283_p13 = pnand %p1022_p10, %p38_p5 }
  0x13   : > { %s1006_s12 = smul.u32 12, %s212_s10  ;;  %s213_s19 = scalar_lea.sflag [#allocation3], %s212_s10 }
  0x14   : > { %s1281_s15 = scalar_lea.hbm %s1567_s0, %s1007_s11  ;;  %p1077_p3 = pneg %p1283_p13 }
  0x15   : > { %s216_s17 = scalar_lea.vmem [#allocation2], %s1006_s12  ;;  %s1075_s20 = scalar_lea.hbm %s1281_s15, 192 }
  0x16   : > { %s224_s18 = sshll.u32 %s216_s17, 4  ;;  %p1076_p2 = scmp.ne.s32.totalorder %s1281_s15, %s1075_s20  ;;  %s225_s18 = int_to_ptr.vmem [resolvable:$true] %s224_s18 }
  0x17   : > { %s1080_s29 = scalar_lea.hbm %s1567_s0, 384  ;;  %p1081_p5 = scmp.lt.s32.totalorder %s1281_s15, %s1567_s0 }
  0x18   : > { %p1078_p4 = pnand %p1077_p3, %p1076_p2  ;;  %p1082_p8 = scmp.lt.s32.totalorder %s1080_s29, %s1075_s20 }
  0x1a   : > { %p1079_p7 = pneg %p1078_p4  ;;  %p1083_p10 = por %p1082_p8, %p1081_p5 }
  0x1c   : > { %p1084_p9 = pnand %p1083_p10, %p1079_p7 }
  0x1e   : > { %1087 = shalt.err (!%p1084_p9)
}
  0x1f   : > { %s1088_s12 = scalar_lea.vmem %s225_s18, 192  ;;  %s1169_s10 = smov [#allocation2]  }
  0x20   : > { %p1089_p0 = scmp.ne.s32.totalorder %s225_s18, %s1088_s12  ;;  %s1093_s14 = sshll.u32 %s1169_s10, 4  ;;  %s1094_s14 = int_to_ptr.vmem [resolvable:$false] %s1093_s14 }
  0x21   : > { %s1095_s17 = scalar_lea.vmem %s1094_s14, 384  ;;  %p1096_p2 = scmp.lt.s32.totalorder %s225_s18, %s1094_s14 }
  0x22   : > { %p1091_p1 = pnand %p1089_p0, %p1077_p3  ;;  %p1097_p4 = scmp.lt.s32.totalorder %s1095_s17, %s1088_s12 }
  0x24   : > { %p1092_p12 = pneg %p1091_p1  ;;  %p1098_p11 = por %p1097_p4, %p1096_p2 }
  0x26   : > { %p1099_p6 = pnand %p1098_p11, %p1092_p12 }
  0x28   : > { %1102 = shalt.err (!%p1099_p6)
}
  0x29   : > { %1017 = dma.hbm_to_vmem [thread:$0]  (!%p1283_p13), %s1281_s15, 192, %s225_s18, %s213_s19  }
  0x2a   : > { %p1580_p9 = scmp.lt.s32.totalorder %s1167_s24, 3  ;;  %p1581_p7 = scmp.ge.s32.totalorder %s1167_s24, 1 }
  0x2c   : > { %p230_p5 = pnand %p1581_p7, %p1580_p9 }
  0x2d   : > { %s1308_s20 = sand.u32 (!%p230_p5), 1, %s1159_s22   ;;  %p1582_p6 = scmp.ne.s32.totalorder (!%p230_p5), %s1576_s7, 0 }
  0x2e   : > { %233 = sbr.rel (%p230_p5) target bundleno = 800 (0x320), region = 44  ;;  %s236_s28 = scalar_lea.sflag (!%p230_p5), [#allocation3], %s1308_s20 }
  0x2f   : > { %s1008_s26 = smul.u32 (!%p230_p5), 12, %s1308_s20 }
  0x31   : > { %s239_s29 = scalar_lea.vmem (!%p230_p5), [#allocation2], %s1008_s26 }
  0x33   : > { %1146 = dma.done.wait (%p1582_p6), %s236_s28, 192  }
  0x34   : > { %1148 = vsyncadd (%p1582_p6), %s236_s28, 4294967104  ;;  %v1318_v0 = vld [vmem:[%s239_s29 + $0x8] sm:$0xf]  ;;  %v1320_v1 = vld [vmem:[%s239_s29] sm:$0xff]  ;;  %s1170_s15 = smov 91   ;;  %s1171_s16 = smov 90   ;;  %v280_v8 = vlaneseq }
  0x35   : > { %340 = vrot.lane.b32.xlu1 %v1318_v0, %s1170_s15  ;;  %336 = vrot.lane.b32.xlu0 %v1320_v1, %s1170_s15  ;;  %v1326_v2 = vcombine.high %v1320_v1, %v1320_v1  ;;  %s1172_s7 = smov 108   ;;  %s1173_s18 = smov 92   ;;  %v1353_v3 = vld [vmem:[%s1568_s1] sm:$0xff]  ;;  %vm419_vm0 = vcmask 293888   ;;  %v1177_v4 = vmov 0.0   ;;  %v1178_v5 = vmov 0  }
  0x36   : > { %s1174_s19 = smov 110   ;;  %s1175_s11 = smov 109   ;;  %499 = vmatprep.mubr.f32.mxu0 %v1177_v4  ;;  %982 = vmatprep.mubr.msk.f32.mxu1 %vm419_vm0, %v1353_v3  ;;  %v407_v6 = vld [vmem:[%s1569_s2] sm:$0xff]  ;;  %v1371_v10 = vand.u32 127, %v280_v8  ;;  %vm392_vm2 = vcmask 1043456   ;;  %vm1185_vm10 = vmmov 0  }
  0x37   : > { %s1176_s10 = smov 127   ;;  %1072 = vset.pattern.permute.xlu0 %v1178_v5  ;;  %1073 = vset.pattern.permute.xlu1 %v1178_v5  ;;  %s1179_s14 = smov 126  }
  0x38   : > { %vm352_vm1 = vcmp.lt.s32.totalorder %v1371_v10, 90  ;;  %vm342_vm3 = vcmp.lt.s32.totalorder %v1371_v10, 91  ;;  %vm332_vm4 = vcmp.lt.s32.totalorder %v1371_v10, 92  ;;  %vm322_vm5 = vcmp.lt.s32.totalorder %v1371_v10, 108  ;;  %s1181_s13 = smov 1   ;;  %s1182_s12 = smov 17  }
  0x39   : > { %346 = vrot.lane.b32.xlu1 %v1320_v1, %s1171_s16  ;;  %338 = vrot.lane.b32.xlu0 %v1326_v2, %s1170_s15  ;;  %vm312_vm6 = vcmp.lt.s32.totalorder %v1371_v10, 109  ;;  %vm302_vm7 = vcmp.lt.s32.totalorder %v1371_v10, 110  ;;  %vm282_vm8 = vcmp.lt.s32.totalorder %v1371_v10, 127  ;;  %vm292_vm9 = vcmp.lt.s32.totalorder %v1371_v10, 126  ;;  %s1184_s17 = smov 19   ;;  %p1583_p12 = scmp.ne.s32.totalorder %s1577_s8, 0 }
  0x3a   : > { %vm667_vm11 = vcmp.lt.s32.totalorder %v1371_v10, 111  ;;  %vm648_vm12 = vcmp.lt.s32.totalorder %v1371_v10, 1  ;;  %vm638_vm13 = vcmp.lt.s32.totalorder %v1371_v10, 17  ;;  %vm628_vm14 = vcmp.lt.s32.totalorder %v1371_v10, 18 }
  0x3b   : > { %vm618_vm15 = vcmp.lt.s32.totalorder %v1371_v10, 19 }
  0x3d   : > { %350 = vrot.lane.b32.xlu1 %v1318_v0, %s1171_s16  ;;  %348 = vrot.lane.b32.xlu0 %v1326_v2, %s1171_s16  ;;  %s1009_s16 = smul.u32 192, %s1243_s25  ;;  %s1186_s25 = smov [#allocation5]  }
  0x3e   : > { %s1107_s28 = sshll.u32 %s1186_s25, 4  ;;  %s1108_s28 = int_to_ptr.vmem [resolvable:$false] %s1107_s28 }
  0x41   : > { %318 = vrot.lane.b32.xlu1 %v1326_v2, %s1172_s7  ;;  %316 = vrot.lane.b32.xlu0 %v1320_v1, %s1172_s7 }
  0x45   : > { %326 = vrot.lane.b32.xlu1 %v1320_v1, %s1173_s18  ;;  %320 = vrot.lane.b32.xlu0 %v1318_v0, %s1172_s7  ;;  %s267_s7 = scalar_lea.vmem [#allocation5], %s1008_s26  ;;  %s1109_s26 = scalar_lea.vmem %s1108_s28, 384 }
  0x49   : > { %330 = vrot.lane.b32.xlu1 %v1318_v0, %s1173_s18  ;;  %328 = vrot.lane.b32.xlu0 %v1326_v2, %s1173_s18  ;;  %s1180_s18 = smov 111  }
  0x4d   : > { %298 = vrot.lane.b32.xlu1 %v1326_v2, %s1174_s19  ;;  %296 = vrot.lane.b32.xlu0 %v1320_v1, %s1174_s19 }
  0x51   : > { %306 = vrot.lane.b32.xlu1 %v1320_v1, %s1175_s11  ;;  %300 = vrot.lane.b32.xlu0 %v1318_v0, %s1174_s19 }
  0x55   : > { %310 = vrot.lane.b32.xlu1 %v1318_v0, %s1175_s11  ;;  %308 = vrot.lane.b32.xlu0 %v1326_v2, %s1175_s11 }
  0x59   : > { %276 = vrot.lane.b32.xlu1 %v1326_v2, %s1176_s10  ;;  %274 = vrot.lane.b32.xlu0 %v1320_v1, %s1176_s10 }
  0x5d   : > { %286 = vrot.lane.b32.xlu1 %v1320_v1, %s1179_s14  ;;  %278 = vrot.lane.b32.xlu0 %v1318_v0, %s1176_s10 }
  0x61   : > { %290 = vrot.lane.b32.xlu1 %v1318_v0, %s1179_s14  ;;  %288 = vrot.lane.b32.xlu0 %v1326_v2, %s1179_s14  ;;  %s1183_s14 = smov 18  }
  0x65   : > { %411 = vperm.xlu0 %1072, %v407_v6  }
  0xa7   : > { %v341_v7 = vpop.permute.xlu1 %340  ;;  %v337_v9 = vpop.permute.xlu0 %336 }
  0xa8   : > { %v345_v22 = vsel %vm342_vm3, %v341_v7, %v337_v9 }
  0xa9   : > { %v388_v25 = vrot.slane %v345_v22, 4 }
  0xab   : > { %v347_v11 = vpop.permute.xlu1 %346  ;;  %v339_v12 = vpop.permute.xlu0 %338 }
  0xac   : > { %v343_v23 = vsel %vm342_vm3, %v339_v12, %v341_v7  ;;  %v344_v24 = vsel %vm342_vm3, %v337_v9, %v339_v12 }
  0xad   : > { %v386_v26 = vrot.slane %v344_v24, 4  ;;  %v387_v27 = vrot.slane %v343_v23, 4  ;;  %v406_v23 = vld [vmem:[%s1568_s1 + $0x8] sm:$0xf] }
  0xaf   : > { %v351_v13 = vpop.permute.xlu1 %350  ;;  %v349_v14 = vpop.permute.xlu0 %348 }
  0xb0   : > { %v353_v15 = vsel %vm352_vm1, %v349_v14, %v351_v13  ;;  %v355_v16 = vsel %vm352_vm1, %v351_v13, %v347_v11  ;;  %v354_v17 = vsel %vm352_vm1, %v347_v11, %v349_v14 }
  0xb1   : > { %943 = vmatprep.subr.msk.mxu0 %vm392_vm2, %v353_v15  ;;  %972 = vmatprep.subr.msk.mxu1 %vm392_vm2, %v355_v16 }
  0xb2   : > { %944 = vmatpush1.msk.msra.mxu0 %vm392_vm2, %v354_v17  ;;  %973 = vmatpush3.msk.msra.mxu1 %vm392_vm2, %v355_v16 }
  0xb3   : > { %v319_v18 = vpop.permute.xlu1 %318  ;;  %v317_v19 = vpop.permute.xlu0 %316 }
  0xb4   : > { %v324_v40 = vsel %vm322_vm5, %v317_v19, %v319_v18 }
  0xb5   : > { %v377_v43 = vrot.slane %v324_v40, 4 }
  0xb7   : > { %v327_v20 = vpop.permute.xlu1 %326  ;;  %v321_v21 = vpop.permute.xlu0 %320 }
  0xb8   : > { %v323_v41 = vsel %vm322_vm5, %v319_v18, %v321_v21  ;;  %v325_v42 = vsel %vm322_vm5, %v321_v21, %v317_v19 }
  0xb9   : > { %v378_v44 = vrot.slane %v323_v41, 4  ;;  %v379_v45 = vrot.slane %v325_v42, 4  ;;  %v408_v42 = vld [vmem:[%s1569_s2 + $0x8] sm:$0xf] }
  0xbb   : > { %v331_v28 = vpop.permute.xlu1 %330  ;;  %v329_v29 = vpop.permute.xlu0 %328 }
  0xbc   : > { %v335_v30 = vsel %vm332_vm4, %v331_v28, %v327_v20  ;;  %v333_v31 = vsel %vm332_vm4, %v329_v29, %v331_v28  ;;  %v334_v32 = vsel %vm332_vm4, %v327_v20, %v329_v29 }
  0xbd   : > { %v403_v33 = vsel %vm392_vm2, %v333_v31, %v387_v27  ;;  %v404_v34 = vsel %vm392_vm2, %v335_v30, %v388_v25  ;;  %v402_v35 = vsel %vm392_vm2, %v334_v32, %v386_v26 }
  0xbe   : > { %459 = vmatprep.subr.mxu0 %v403_v33  ;;  %974 = vmatprep.subr.mxu1 %v404_v34 }
  0xbf   : > { %975 = vmatpush3.msra.mxu1 %v404_v34  ;;  %v299_v36 = vpop.permute.xlu1 %298  ;;  %460 = vmatpush1.msra.mxu0 %v402_v35  ;;  %v297_v37 = vpop.permute.xlu0 %296 }
  0xc0   : > { %v304_v56 = vsel %vm302_vm7, %v297_v37, %v299_v36 }
  0xc1   : > { %v368_v5 = vrot.slane %v304_v56, 4 }
  0xc3   : > { %v307_v38 = vpop.permute.xlu1 %306  ;;  %v301_v39 = vpop.permute.xlu0 %300 }
  0xc4   : > { %v303_v59 = vsel %vm302_vm7, %v299_v36, %v301_v39  ;;  %v305_v60 = vsel %vm302_vm7, %v301_v39, %v297_v37 }
  0xc5   : > { %v369_v6 = vrot.slane %v303_v59, 4  ;;  %v370_v7 = vrot.slane %v305_v60, 4 }
  0xc7   : > { %v311_v46 = vpop.permute.xlu1 %310  ;;  %v309_v47 = vpop.permute.xlu0 %308 }
  0xc8   : > { %v315_v48 = vsel %vm312_vm6, %v311_v46, %v307_v38  ;;  %v313_v49 = vsel %vm312_vm6, %v309_v47, %v311_v46  ;;  %v314_v50 = vsel %vm312_vm6, %v307_v38, %v309_v47 }
  0xc9   : > { %v400_v51 = vsel %vm392_vm2, %v313_v49, %v378_v44  ;;  %v401_v52 = vsel %vm392_vm2, %v315_v48, %v379_v45  ;;  %v399_v53 = vsel %vm392_vm2, %v314_v50, %v377_v43  ;;  %v690_v43 = vld [vmem:[%s1571_s4] sm:$0xf] }
  0xca   : > { %461 = vmatprep.subr.mxu0 %v400_v51  ;;  %976 = vmatprep.subr.mxu1 %v401_v52 }
  0xcb   : > { %v277_v54 = vpop.permute.xlu1 %276  ;;  %462 = vmatpush1.msra.mxu0 %v399_v53  ;;  %977 = vmatpush3.msra.mxu1 %v401_v52  ;;  %v275_v55 = vpop.permute.xlu0 %274 }
  0xcc   : > { %v284_v63 = vsel %vm282_vm8, %v275_v55, %v277_v54 }
  0xcd   : > { %v359_v14 = vrot.slane %v284_v63, 4 }
  0xcf   : > { %v287_v57 = vpop.permute.xlu1 %286  ;;  %v279_v58 = vpop.permute.xlu0 %278  ;;  %v393_v24 = vsel %vm392_vm2, %v1320_v1, %v359_v14  ;;  %v270_v1 = vld [vmem:[%s1572_s5] sm:$0x7] }
  0xd0   : > { %v283_v61 = vsel %vm282_vm8, %v277_v54, %v279_v58  ;;  %v285_v62 = vsel %vm282_vm8, %v279_v58, %v275_v55 }
  0xd1   : > { %v360_v9 = vrot.slane %v283_v61, 4  ;;  %v361_v11 = vrot.slane %v285_v62, 4 }
  0xd3   : > { %v291_v12 = vpop.permute.xlu1 %290  ;;  %v289_v13 = vpop.permute.xlu0 %288  ;;  %v394_v21 = vsel %vm392_vm2, %v1326_v2, %v360_v9  ;;  %v395_v22 = vsel %vm392_vm2, %v1318_v0, %v361_v11  ;;  %v595_v0 = vshrl.u32 %v280_v8, 7 }
  0xd4   : > { %v295_v15 = vsel %vm292_vm9, %v291_v12, %v287_v57  ;;  %v293_v16 = vsel %vm292_vm9, %v289_v13, %v291_v12  ;;  %v294_v17 = vsel %vm292_vm9, %v287_v57, %v289_v13 }
  0xd5   : > { %v397_v18 = vsel %vm392_vm2, %v293_v16, %v369_v6  ;;  %v398_v19 = vsel %vm392_vm2, %v295_v15, %v370_v7  ;;  %v396_v20 = vsel %vm392_vm2, %v294_v17, %v368_v5  ;;  %v596_v2 = vsub.s32 0, %v595_v0 }
  0xd6   : > { %463 = vmatprep.subr.mxu0 %v397_v18  ;;  %978 = vmatprep.subr.mxu1 %v398_v19  ;;  %v604_v26 = vsub.s32 2, %v595_v0  ;;  %v600_v38 = vsub.s32 1, %v595_v0 }
  0xd7   : > { %464 = vmatpush1.msra.mxu0 %v396_v20  ;;  %979 = vmatpush3.msra.mxu1 %v398_v19  ;;  %v597_v28 = vrot.slane %v270_v1, %v596_v2 }
  0xd8   : > { %465 = vmatprep.subr.mxu0 %v394_v21  ;;  %980 = vmatprep.subr.mxu1 %v395_v22  ;;  %v605_v33 = vrot.slane %v270_v1, %v604_v26  ;;  %v601_v40 = vrot.slane %v270_v1, %v600_v38 }
  0xd9   : > { %466 = vmatpush1.msra.mxu0 %v393_v24  ;;  %981 = vmatpush3.msra.mxu1 %v395_v22 }
  0xda   : > { %945 = vmatmul.mubr.msk.f32.vlgmr.msra.gmra.mxu0 %vm419_vm0, %v1353_v3  ;;  %983 = vmatmul.mubr.msk.f32.vlgmr.msra.gmra.mxu1 %vm419_vm0, %v406_v23 }
  0xdb   : > { %505 = vmatprep.mubr.f32.mxu0 %v1177_v4  ;;  %985 = vmatprep.subr.mxu1 %v1177_v4 }
  0xdc   : > { %1003 = vmatprep.mubr.msk.f32.mxu1 %vm1185_vm10, %v1177_v4 }
  0xde   : > { %946 = vmatmul.mubr.msk.f32.gmra.mxu0 %vm419_vm0, %v406_v23  ;;  %vm696_vm0 = vcmask 588800  }
  0xdf   : > { %764 = vmatprep.mubr.f32.mxu0 %v1177_v4 }
  0xe0   : > { %v412_v25 = vpop.permute.xlu0 %411 }
 0x19a   : > { %v501_v3 = vpop.f32.mrf.mxu0  ;;  %v1432_v27 = vpop.f32.mrf.mxu1 }
 0x19b   : > { %v502_v29 = vadd.f32 %v501_v3, %v412_v25 }
 0x19c   : > { %v578_v30 = vpop.f32.mrf.mxu1  ;;  %v503_v36 = vpop.f32.mrf.mxu0 }
 0x19d   : > { %v587_v31 = vmax.f32 %v502_v29, 0.0  ;;  %v579_v32 = vadd.f32 %v578_v30, %v412_v25  ;;  %v504_v37 = vadd.f32 %v503_v36, %v412_v25  ;;  %v689_v30 = vld [vmem:[%s1570_s3] sm:$0xf] }
 0x19f   : > { %v1434_v34 = vmul.f32 %v597_v28, %v587_v31  ;;  %v589_v35 = vmax.f32 %v579_v32, 0.0  ;;  %v588_v39 = vmax.f32 %v504_v37, 0.0 }
 0x1a1   : > { %v1436_v8 = vmul.f32 %v605_v33, %v589_v35  ;;  %680 = vrot.lane.b32.xlu0 %v1434_v34, %s1175_s11  ;;  %v1456_v41 = vmul.f32 %v601_v40, %v588_v39  ;;  %v507_v33 = vpop.f32.mrf.mxu0 }
 0x1a3   : > { %684 = vrot.lane.b32.xlu1 %v1436_v8, %s1175_s11 }
 0x1a5   : > { %675 = vrot.lane.b32.xlu0 %v1436_v8, %s1174_s19 }
 0x1a7   : > { %671 = vrot.lane.b32.xlu1 %v1434_v34, %s1174_s19 }
 0x1a9   : > { %661 = vrot.lane.b32.xlu0 %v1434_v34, %s1180_s18 }
 0x1ab   : > { %665 = vrot.lane.b32.xlu1 %v1436_v8, %s1180_s18 }
 0x1ad   : > { %656 = vrot.lane.b32.xlu0 %v1436_v8, %s1176_s10 }
 0x1af   : > { %652 = vrot.lane.b32.xlu1 %v1434_v34, %s1176_s10 }
 0x1b1   : > { %642 = vrot.lane.b32.xlu0 %v1434_v34, %s1181_s13 }
 0x1b3   : > { %632 = vrot.lane.b32.xlu1 %v1434_v34, %s1182_s12 }
 0x1b5   : > { %646 = vrot.lane.b32.xlu0 %v1436_v8, %s1181_s13 }
 0x1b7   : > { %636 = vrot.lane.b32.xlu1 %v1436_v8, %s1182_s12 }
 0x1b9   : > { %622 = vrot.lane.b32.xlu0 %v1434_v34, %s1183_s14 }
 0x1bb   : > { %682 = vrot.lane.b32.xlu1 %v1456_v41, %s1175_s11 }
 0x1bd   : > { %663 = vrot.lane.b32.xlu0 %v1456_v41, %s1180_s18  ;;  %s868_s18 = sshll.u32 %s267_s7, 4  ;;  %s869_s18 = int_to_ptr.vmem [resolvable:$true] %s868_s18 }
 0x1be   : > { %s1103_s11 = scalar_lea.vmem %s869_s18, 192  ;;  %p1110_p1 = scmp.lt.s32.totalorder %s869_s18, %s1108_s28 }
 0x1bf   : > { %673 = vrot.lane.b32.xlu1 %v1456_v41, %s1174_s19  ;;  %p1104_p11 = scmp.ne.s32.totalorder %s869_s18, %s1103_s11  ;;  %p1111_p3 = scmp.lt.s32.totalorder %s1109_s26, %s1103_s11 }
 0x1c1   : > { %626 = vrot.lane.b32.xlu0 %v1436_v8, %s1183_s14  ;;  %p1105_p13 = pnand %p1104_p11, %p1583_p12  ;;  %p1112_p8 = por %p1111_p3, %p1110_p1 }
 0x1c3   : > { %612 = vrot.lane.b32.xlu1 %v1434_v34, %s1184_s17  ;;  %p1106_p0 = pneg %p1105_p13 }
 0x1c5   : > { %634 = vrot.lane.b32.xlu0 %v1456_v41, %s1182_s12  ;;  %p1113_p10 = pnand %p1112_p8, %p1106_p0 }
 0x1c7   : > { %654 = vrot.lane.b32.xlu1 %v1456_v41, %s1176_s10 }
 0x1c9   : > { %614 = vrot.lane.b32.xlu0 %v1456_v41, %s1184_s17 }
 0x1cb   : > { %644 = vrot.lane.b32.xlu1 %v1456_v41, %s1181_s13 }
 0x1cd   : > { %416 = vperm.xlu0 %1072, %v408_v42  }
 0x1cf   : > { %624 = vrot.lane.b32.xlu1 %v1456_v41, %s1183_s14  ;;  %s866_s14 = scalar_lea.hbm %s1573_s6, %s1009_s16 }
 0x1d3   : > { %616 = vrot.lane.b32.xlu1 %v1436_v8, %s1184_s17  ;;  %s854_s17 = scalar_lea.sflag [#allocation4], %s1308_s20 }
 0x1d7   : > { %693 = vperm.xlu1 %1073, %v690_v43  }
 0x213   : > { %v681_v44 = vpop.permute.xlu0 %680 }
 0x215   : > { %v685_v45 = vpop.permute.xlu1 %684 }
 0x216   : > { %v688_v46 = vsel %vm312_vm6, %v685_v45, %v681_v44 }
 0x217   : > { %986 = vmatpush3.msra.mxu1 %v688_v46  ;;  %v676_v47 = vpop.permute.xlu0 %675 }
 0x218   : > { %987 = vmatprep.subr.mxu1 %v1177_v4 }
 0x219   : > { %v672_v48 = vpop.permute.xlu1 %671 }
 0x21a   : > { %v679_v49 = vsel %vm302_vm7, %v676_v47, %v672_v48 }
 0x21b   : > { %988 = vmatpush3.msra.mxu1 %v679_v49  ;;  %v662_v50 = vpop.permute.xlu0 %661 }
 0x21c   : > { %989 = vmatprep.subr.mxu1 %v1177_v4 }
 0x21d   : > { %v666_v51 = vpop.permute.xlu1 %665 }
 0x21e   : > { %v670_v52 = vsel %vm667_vm11, %v666_v51, %v662_v50 }
 0x21f   : > { %990 = vmatpush3.msra.mxu1 %v670_v52  ;;  %v657_v53 = vpop.permute.xlu0 %656 }
 0x220   : > { %991 = vmatprep.subr.mxu1 %v1177_v4 }
 0x221   : > { %v653_v54 = vpop.permute.xlu1 %652 }
 0x222   : > { %v660_v55 = vsel %vm282_vm8, %v657_v53, %v653_v54 }
 0x223   : > { %992 = vmatpush3.msra.mxu1 %v660_v55  ;;  %v643_v56 = vpop.permute.xlu0 %642 }
 0x224   : > { %993 = vmatprep.subr.mxu1 %v1177_v4 }
 0x225   : > { %v633_v57 = vpop.permute.xlu1 %632  ;;  %994 = vmatpush3.msra.mxu1 %v1436_v8 }
 0x226   : > { %995 = vmatprep.subr.mxu1 %v1177_v4 }
 0x227   : > { %v647_v58 = vpop.permute.xlu0 %646 }
 0x228   : > { %v651_v22 = vsel %vm648_vm12, %v647_v58, %v643_v56 }
 0x229   : > { %v637_v59 = vpop.permute.xlu1 %636 }
 0x22a   : > { %v641_v0 = vsel %vm638_vm13, %v637_v59, %v633_v57 }
 0x22b   : > { %v623_v60 = vpop.permute.xlu0 %622 }
 0x22d   : > { %v683_v61 = vpop.permute.xlu1 %682 }
 0x22e   : > { %v687_v62 = vsel %vm312_vm6, %v681_v44, %v683_v61  ;;  %v686_v63 = vsel %vm312_vm6, %v683_v61, %v685_v45 }
 0x22f   : > { %714 = vmatprep.subr.mxu0 %v686_v63  ;;  %v664_v5 = vpop.permute.xlu0 %663 }
 0x230   : > { %715 = vmatpush1.msra.mxu0 %v687_v62  ;;  %v668_v11 = vsel %vm667_vm11, %v664_v5, %v666_v51  ;;  %v669_v12 = vsel %vm667_vm11, %v662_v50, %v664_v5 }
 0x231   : > { %v674_v6 = vpop.permute.xlu1 %673 }
 0x232   : > { %v678_v7 = vsel %vm302_vm7, %v672_v48, %v674_v6  ;;  %v677_v9 = vsel %vm302_vm7, %v674_v6, %v676_v47 }
 0x233   : > { %716 = vmatprep.subr.mxu0 %v677_v9  ;;  %v627_v13 = vpop.permute.xlu0 %626 }
 0x234   : > { %717 = vmatpush1.msra.mxu0 %v678_v7  ;;  %v631_v3 = vsel %vm628_vm14, %v627_v13, %v623_v60 }
 0x235   : > { %v613_v14 = vpop.permute.xlu1 %612  ;;  %718 = vmatprep.subr.mxu0 %v668_v11 }
 0x236   : > { %719 = vmatpush1.msra.mxu0 %v669_v12 }
 0x237   : > { %v635_v18 = vpop.permute.xlu0 %634 }
 0x238   : > { %v639_v23 = vsel %vm638_vm13, %v635_v18, %v637_v59  ;;  %v640_v24 = vsel %vm638_vm13, %v633_v57, %v635_v18 }
 0x239   : > { %v655_v15 = vpop.permute.xlu1 %654 }
 0x23a   : > { %v659_v16 = vsel %vm282_vm8, %v653_v54, %v655_v15  ;;  %v658_v17 = vsel %vm282_vm8, %v655_v15, %v657_v53 }
 0x23b   : > { %720 = vmatprep.subr.mxu0 %v658_v17  ;;  %v615_v2 = vpop.permute.xlu0 %614 }
 0x23c   : > { %721 = vmatpush1.msra.mxu0 %v659_v16  ;;  %v620_v28 = vsel %vm618_vm15, %v613_v14, %v615_v2 }
 0x23d   : > { %v645_v19 = vpop.permute.xlu1 %644  ;;  %722 = vmatprep.subr.mxu0 %v1456_v41 }
 0x23e   : > { %v649_v20 = vsel %vm648_vm12, %v645_v19, %v647_v58  ;;  %723 = vmatpush1.msra.mxu0 %v1434_v34  ;;  %v650_v21 = vsel %vm648_vm12, %v643_v56, %v645_v19 }
 0x23f   : > { %724 = vmatprep.subr.mxu0 %v650_v21  ;;  %996 = vmatpush3.msra.mxu1 %v649_v20 }
 0x240   : > { %725 = vmatpush1.msra.mxu0 %v651_v22  ;;  %997 = vmatprep.subr.mxu1 %v1177_v4 }
 0x241   : > { %v625_v1 = vpop.permute.xlu1 %624  ;;  %726 = vmatprep.subr.mxu0 %v640_v24  ;;  %998 = vmatpush3.msra.mxu1 %v639_v23 }
 0x242   : > { %v629_v25 = vsel %vm628_vm14, %v625_v1, %v627_v13  ;;  %727 = vmatpush1.msra.mxu0 %v641_v0  ;;  %999 = vmatprep.subr.mxu1 %v1177_v4  ;;  %v630_v26 = vsel %vm628_vm14, %v623_v60, %v625_v1 }
 0x243   : > { %728 = vmatprep.subr.mxu0 %v630_v26  ;;  %1000 = vmatpush3.msra.mxu1 %v629_v25 }
 0x244   : > { %729 = vmatpush1.msra.mxu0 %v631_v3  ;;  %1001 = vmatprep.subr.mxu1 %v1177_v4  ;;  %v509_v4 = vpop.f32.mrf.mxu0 }
 0x245   : > { %v617_v29 = vpop.permute.xlu1 %616  ;;  %730 = vmatprep.subr.mxu0 %v620_v28 }
 0x246   : > { %v619_v31 = vsel %vm618_vm15, %v615_v2, %v617_v29  ;;  %v621_v32 = vsel %vm618_vm15, %v617_v29, %v613_v14 }
 0x247   : > { %731 = vmatpush1.msra.mxu0 %v621_v32  ;;  %1002 = vmatpush3.msra.mxu1 %v619_v31 }
 0x248   : > { %950 = vmatmul.mubr.msk.f32.vlgmr.msra.gmra.mxu0 %vm696_vm0, %v689_v30  ;;  %1004 = vmatmul.mubr.msk.f32.vlgmr.msra.gmra.mxu1 %vm696_vm0, %v689_v30  ;;  %v417_v34 = vpop.permute.xlu0 %416 }
 0x249   : > { %v584_v8 = vadd.f32 %v1432_v27, %v417_v34  ;;  %v508_v38 = vadd.f32 %v507_v33, %v417_v34  ;;  %v510_v39 = vadd.f32 %v509_v4, %v417_v34 }
 0x24b   : > { %v592_v43 = vmax.f32 %v584_v8, 0.0  ;;  %v590_v47 = vmax.f32 %v508_v38, 0.0  ;;  %v591_v48 = vmax.f32 %v510_v39, 0.0 }
 0x252   : > { %v694_v35 = vpop.permute.xlu1 %693 }
 0x308   : > { %v766_v36 = vpop.f32.mrf.mxu0  ;;  %v837_v37 = vpop.f32.mrf.mxu1 }
 0x309   : > { %v767_v40 = vadd.f32 %v766_v36, %v694_v35  ;;  %v838_v41 = vadd.f32 %v837_v37, %v694_v35 }
 0x30a   : > { %v768_v10 = vpop.f32.mrf.mxu0  ;;  %v1005_v42 = vpop.f32.mrf.mxu1 }
 0x30b   : > { %v841_v44 = vmax.f32 %v767_v40, 0.0  ;;  %v843_v45 = vmax.f32 %v838_v41, 0.0  ;;  %v769_v46 = vadd.f32 %v768_v10, %v694_v35 }
 0x30d   : > { %v846_v49 = vadd.f32 %v843_v45, %v592_v43  ;;  %v842_v27 = vmax.f32 %v769_v46, 0.0  ;;  %v844_v50 = vadd.f32 %v841_v44, %v590_v47 }
 0x30f   : > { %852 = vst [vmem:[%s267_s7 + $0x8] sm:$0xf] %v846_v49  ;;  %v845_v51 = vadd.f32 %v842_v27, %v591_v48 }
 0x311   : > { %v849_v52 = vcombine.low %v844_v50, %v845_v51 }
 0x313   : > { %851 = vst [vmem:[%s267_s7] sm:$0xff] %v849_v52 }
 0x314   : > { %1116 = shalt.err (!%p1113_p10)
}
 0x315   : > { %s1117_s19 = scalar_lea.hbm %s866_s14, 192  ;;  %s1121_s10 = scalar_lea.hbm %s1573_s6, 384 }
 0x316   : > { %p1118_p2 = scmp.ne.s32.totalorder %s866_s14, %s1117_s19  ;;  %p1122_p7 = scmp.lt.s32.totalorder %s866_s14, %s1573_s6 }
 0x317   : > { %p1123_p5 = scmp.lt.s32.totalorder %s1121_s10, %s1117_s19 }
 0x318   : > { %p1119_p4 = pnand %p1118_p2, %p1583_p12 }
 0x319   : > { %p1124_p6 = por %p1123_p5, %p1122_p7 }
 0x31a   : > { %p1120_p9 = pneg %p1119_p4 }
 0x31c   : > { %p1125_p11 = pnand %p1124_p6, %p1120_p9 }
 0x31e   : > { %1128 = shalt.err (!%p1125_p11)
}
 0x31f   : > { %1012 = dma.vmem_to_hbm [thread:$0]  (%p1583_p12), %s869_s18, 192, %s866_s14, %s854_s17  }
 0x320 PF: > { %s880_s7 = sand.u32 1, %s1155_s21   ;;  %p1584_p13 = scmp.ne.s32.totalorder %s1578_s9, 0 }
 0x321   : > { %p1585_p0 = scmp.ge.s32.totalorder %s1167_s24, 2  ;;  %s881_s13 = scalar_lea.sflag [#allocation4], %s880_s7 }
 0x323   : > { %p1019_p1 = pnand %p1585_p0, %p1584_p13 }
 0x325   : > { %p1020_p3 = pneg %p1019_p1 }
 0x327   : > { %1150 = dma.done.wait (%p1020_p3), %s881_s13, 192  }
 0x328   : > { %1152 = vsyncadd (%p1020_p3), %s881_s13, 4294967104  ;;  %p19_p8 = scmp.ge.s32.totalorder %s1247_s27, 4   ;;  %s1586_s21 = smov %s1159_s22 }
 0x329   : > { %s1587_s22 = smov %s1163_s23  ;;  %s1588_s23 = smov %s1259_s30 }
 0x32a   : > { %s1589_s24 = smov %s1247_s27  ;;  %21 = sbr.rel (!%p19_p8) target bundleno = 5 (0x5), region = 89 }
 0x32f   :  { %886 = vsyncpa [#allocation3], 1 }
 0x330   :  { %888 = vsyncpa [#allocation3 + $0x1], 1 }
 0x331   :  { %889 = vsyncpa [#allocation4], 1 }
 0x332   :  { %891 = vsyncpa [#allocation4 + $0x1], 1 }

</bundles_post_ra>
